<compile_context>
chip_gen: v5e
topology: v5e:2x2
jax: 0.10.0
libtpu: 0.0.40
codegen_flags: <defaults>
</compile_context>

<pallas_src>
import functools

import numpy as np

import jax
import jax.numpy as jnp
from jax.experimental import pallas as pl
from jax.experimental.pallas import tpu as pltpu


_CHUNK_LANES = 1024  # lane width of the gate-broadcast / multiply tiles


def _chunks(hw):
    """Static (start, size) lane chunks covering [0, hw); starts are 1024-aligned."""
    if hw <= _CHUNK_LANES:
        return ((0, hw),)
    out, s = [], 0
    while s < hw:
        sz = min(_CHUNK_LANES, hw - s)
        out.append((s, sz))
        s += sz
    return tuple(out)


@functools.lru_cache(maxsize=None)
def _indicators(H, W, dtype_name):
    """0/1 pooling / broadcast matrices, built once per (H, W, dtype)."""
    HW = H * W
    pos = np.arange(HW)
    ph = (pos[:, None] // W == np.arange(H)[None, :]).astype(np.float32)   # (HW, H)
    pw = (pos[:, None] % W == np.arange(W)[None, :]).astype(np.float32)    # (HW, W)
    dt = jnp.dtype(dtype_name)
    P = jnp.asarray(np.concatenate([ph, pw], axis=1), dt)                  # (HW, H+W)
    eh = jnp.asarray(ph.T, dt)                                             # (H, HW)
    ew = jnp.asarray(pw.T, dt)                                             # (W, HW)
    return P, eh, ew


def coordatt_kernel(x_ref, p_ref, eh_ref, ew_ref, w1_ref, b1_ref,
                    wh_ref, ww_ref, bg_ref, out_ref, *, H, W, chunks):
    # --- fused coordinate pooling: one MXU pass of the native-dtype slab ---
    pooled = jnp.dot(x_ref[...], p_ref[...],
                     preferred_element_type=jnp.float32)                   # (C, H+W)
    pos = jax.lax.broadcasted_iota(jnp.int32, (1, H + W), 1)
    pooled = pooled * jnp.where(pos < H, 1.0 / W, 1.0 / H)                 # mean scale

    # --- conv1 (1x1, BN pre-folded) + h_swish on the concatenated branches ---
    y = jnp.dot(w1_ref[...], pooled, preferred_element_type=jnp.float32) + b1_ref[...]
    y = y * jnp.clip(y + 3.0, 0.0, 6.0) * (1.0 / 6.0)                      # (mip, H+W)

    # --- gate convs (1x1) + sigmoid ---
    a_h = jax.nn.sigmoid(
        jnp.dot(wh_ref[...], y[:, :H], preferred_element_type=jnp.float32)
        + bg_ref[:, 0:1])                                                  # (C, H)
    a_w = jax.nn.sigmoid(
        jnp.dot(ww_ref[...], y[:, H:], preferred_element_type=jnp.float32)
        + bg_ref[:, 1:2])                                                  # (C, W)

    gd = eh_ref.dtype                                                      # bf16 iff x is bf16
    a_h = a_h.astype(gd)
    a_w = a_w.astype(gd)

    # --- chunked gate broadcast (0/1 MXU matmuls) + multiply + store ---
    # g_h[c, p] = a_h[c, p // W], g_w[c, p] = a_w[c, p % W]; no full (C, HW)
    # f32 intermediates are ever live.
    for s, sz in chunks:
        g_h = jnp.dot(a_h, eh_ref[:, s:s + sz], preferred_element_type=jnp.float32)
        g_w = jnp.dot(a_w, ew_ref[:, s:s + sz], preferred_element_type=jnp.float32)
        g = (g_w * g_h).astype(out_ref.dtype)
        out_ref[:, s:s + sz] = (x_ref[:, s:s + sz] * g).astype(out_ref.dtype)


def coord_att(x, params):
    """x: (N, C, H, W). params: raw CoordAtt parameters (see make_params)."""
    N, C, H, W = x.shape
    HW = H * W

    # --- fold BatchNorm (inference) into conv1 ---
    s, t = params["bn_scale"], params["bn_shift"]             # (mip, 1)
    w1f = (s * params["w1"]).astype(jnp.float32)              # (mip, C)
    b1f = (s * params["b1"] + t).astype(jnp.float32)          # (mip, 1)
    wh = params["wh"].astype(jnp.float32)                     # (Cout, mip)
    ww = params["ww"].astype(jnp.float32)
    bg = jnp.concatenate([params["bh"], params["bw"]], axis=1).astype(jnp.float32)  # (C, 2)
    mip = w1f.shape[0]
    Cout = wh.shape[0]
    assert Cout == C, "identity * a_w * a_h requires out_channel == in_channel"

    # --- cached 0/1 pooling / broadcast matrices (bf16 when x is bf16) ---
    ind_dtype = jnp.bfloat16 if x.dtype == jnp.bfloat16 else jnp.float32
    P, eh, ew = _indicators(H, W, jnp.dtype(ind_dtype).name)

    chunks = _chunks(HW)
    x_flat = x.reshape(N, C, HW)                              # free: NCHW is contiguous
    elt = x.dtype.itemsize

    def full_spec(a):
        nd = a.ndim
        return pl.BlockSpec(a.shape, lambda n, _nd=nd: (0,) * _nd)

    slab_spec = pl.BlockSpec((pl.Squeezed(), C, HW), lambda n: (n, 0, 0))

    # --- advisory cost estimate (memory-bound elementwise op) ---
    matmul_flops = (2 * C * HW * (H + W)          # fused pooling
                    + 2 * mip * C * (H + W)       # conv1
                    + 2 * C * mip * (H + W)       # gate convs
                    + 2 * C * HW * (H + W))       # gate broadcast
    inv_bytes = sum(int(a.size) * a.dtype.itemsize
                    for a in (P, eh, ew, w1f, b1f, wh, ww, bg))
    cost = pl.CostEstimate(
        flops=int(N * (matmul_flops + 3 * C * HW + 8 * C * (H + W))),
        transcendentals=int(N * C * (H + W)),
        bytes_accessed=int(2 * N * C * HW * elt + inv_bytes),
    )

    # --- VMEM budget: double-buffered in/out slabs + resident weights +
    #     in-kernel intermediates (pooled, per-chunk gates, conservative slab
    #     materialization) — capped by the generation's physical VMEM minus
    #     compiler-scratch headroom. ---
    slab_bytes = C * HW * elt
    chunk_max = max(sz for _, sz in chunks)
    inter_bytes = (slab_bytes                       # conservative: pooling LHS value
                   + 3 * C * chunk_max * 4          # g_h, g_w, product per chunk
                   + 4 * (C + mip) * (H + W) * 4    # pooled, y, a_h, a_w
                   + (2 << 20))
    needed = 2 * 2 * slab_bytes + 2 * inv_bytes + inter_bytes
    try:
        cap = int(getattr(pltpu.get_tpu_info(), "vmem_capacity_bytes", 128 << 20))
    except Exception:  # pragma: no cover - defensive (e.g. interpret mode)
        cap = 128 << 20
    headroom = 8 << 20
    vmem_limit = int(min(max(cap - headroom, 16 << 20), max(32 << 20, needed)))

    kernel = functools.partial(coordatt_kernel, H=H, W=W, chunks=chunks)

    out_flat = pl.pallas_call(
        kernel,
        out_shape=jax.ShapeDtypeStruct((N, C, HW), x.dtype),
        grid_spec=pltpu.PrefetchScalarGridSpec(
            num_scalar_prefetch=0,
            grid=(N,),
            in_specs=[
                slab_spec,
                full_spec(P), full_spec(eh), full_spec(ew),
                full_spec(w1f), full_spec(b1f),
                full_spec(wh), full_spec(ww), full_spec(bg),
            ],
            out_specs=pl.BlockSpec((pl.Squeezed(), C, HW), lambda n: (n, 0, 0)),
        ),
        compiler_params=pltpu.CompilerParams(
            dimension_semantics=("parallel",),
            vmem_limit_bytes=vmem_limit,
        ),
        cost_estimate=cost,
    )(x_flat, P, eh, ew, w1f, b1f, wh, ww, bg)

    return out_flat.reshape(N, C, H, W)


def make_params(in_channel, out_channel, reduction=32, seed=0):
    mip = max(8, in_channel // reduction)
    keys = jax.random.split(jax.random.PRNGKey(seed), 6)
    w1 = jax.random.normal(keys[0], (mip, in_channel), jnp.float32) * 0.5
    b1 = jax.random.normal(keys[1], (mip, 1), jnp.float32) * 0.1
    wh = jax.random.normal(keys[2], (out_channel, mip), jnp.float32) * 0.5
    bh = jax.random.normal(keys[3], (out_channel, 1), jnp.float32) * 0.1
    ww = jax.random.normal(keys[4], (out_channel, mip), jnp.float32) * 0.5
    bw = jax.random.normal(keys[5], (out_channel, 1), jnp.float32) * 0.1
    # BatchNorm2d defaults (eval): gamma=1, beta=0, running_mean=0, running_var=1
    eps = 1e-5
    gamma = jnp.ones((mip, 1), jnp.float32)
    beta = jnp.zeros((mip, 1), jnp.float32)
    running_mean = jnp.zeros((mip, 1), jnp.float32)
    running_var = jnp.ones((mip, 1), jnp.float32)
    bn_scale = gamma / jnp.sqrt(running_var + eps)
    bn_shift = beta - running_mean * bn_scale
    return {"w1": w1, "b1": b1, "bn_scale": bn_scale, "bn_shift": bn_shift,
            "wh": wh, "bh": bh, "ww": ww, "bw": bw}


def coord_att_ref(x, params):
    """Pure-JAX reference implementing the PyTorch forward exactly."""
    N, C, H, W = x.shape
    x_h = jnp.mean(x, axis=3)                      # (N, C, H)
    x_w = jnp.mean(x, axis=2)                      # (N, C, W)
    y = jnp.concatenate([x_h, x_w], axis=2)        # (N, C, H+W)
    y = jnp.einsum("mc,ncp->nmp", params["w1"], y) + params["b1"][None]
    y = y * params["bn_scale"][None] + params["bn_shift"][None]
    y = y * jnp.clip(y + 3.0, 0.0, 6.0) / 6.0
    y_h, y_w = y[:, :, :H], y[:, :, H:]
    a_h = jax.nn.sigmoid(jnp.einsum("om,nmp->nop", params["wh"], y_h) + params["bh"][None])
    a_w = jax.nn.sigmoid(jnp.einsum("om,nmp->nop", params["ww"], y_w) + params["bw"][None])
    return x * a_w[:, :, None, :] * a_h[:, :, :, None]


if __name__ == "__main__":
    N, C, H, W = 2, 4, 16, 16
    x = jax.random.normal(jax.random.PRNGKey(0), (N, C, H, W), jnp.float32)
    params = make_params(in_channel=C, out_channel=C, reduction=32, seed=0)

    # f32 path (f32 indicators -> tight check vs pure-JAX reference).
    out = jax.block_until_ready(coord_att(x, params))
    ref = coord_att_ref(x, params)
    assert out.shape == (N, C, H, W) and out.dtype == x.dtype
    assert jnp.allclose(out, ref, atol=1e-5, rtol=1e-5), "f32 mismatch vs JAX reference"

    # bf16 I/O path (bf16 slab + bf16 indicator matmuls; f32 accumulation).
    x_bf = x.astype(jnp.bfloat16)
    out_bf = jax.block_until_ready(coord_att(x_bf, params))
    ref_bf = coord_att_ref(x_bf.astype(jnp.float32), params)
    assert out_bf.dtype == jnp.bfloat16
    assert jnp.allclose(out_bf.astype(jnp.float32), ref_bf, atol=2e-2, rtol=2e-2), \
        "bf16 mismatch vs JAX reference"

    print("KERNEL_OK")
</pallas_src>

<mosaic_0001>
module attributes {stable_mosaic.version = 11 : i64} {
  func.func @coordatt_kernel(%arg0: i32, %arg1: memref<1x4x256xf32, #tpu.memory_space<vmem>>, %arg2: memref<256x32xf32, #tpu.memory_space<vmem>>, %arg3: memref<16x256xf32, #tpu.memory_space<vmem>>, %arg4: memref<16x256xf32, #tpu.memory_space<vmem>>, %arg5: memref<8x4xf32, #tpu.memory_space<vmem>>, %arg6: memref<8x1xf32, #tpu.memory_space<vmem>>, %arg7: memref<4x8xf32, #tpu.memory_space<vmem>>, %arg8: memref<4x8xf32, #tpu.memory_space<vmem>>, %arg9: memref<4x2xf32, #tpu.memory_space<vmem>>, %arg10: memref<1x4x256xf32, #tpu.memory_space<vmem>>) attributes {dimension_semantics = [#tpu.dimension_semantics<parallel>], iteration_bounds = array<i64: 2>, scalar_prefetch = 0 : i64, scratch_operands = 0 : i64, tpu.core_type = #tpu.core_type<tc>, window_params = [{transform_indices = @transform_0, window_bounds = array<i64: 1, 4, 256>}, {pipeline_mode = #tpu.pipeline_mode<synchronous>, transform_indices = @transform_1, window_bounds = array<i64: 256, 32>}, {pipeline_mode = #tpu.pipeline_mode<synchronous>, transform_indices = @transform_2, window_bounds = array<i64: 16, 256>}, {pipeline_mode = #tpu.pipeline_mode<synchronous>, transform_indices = @transform_3, window_bounds = array<i64: 16, 256>}, {pipeline_mode = #tpu.pipeline_mode<synchronous>, transform_indices = @transform_4, window_bounds = array<i64: 8, 4>}, {pipeline_mode = #tpu.pipeline_mode<synchronous>, transform_indices = @transform_5, window_bounds = array<i64: 8, 1>}, {pipeline_mode = #tpu.pipeline_mode<synchronous>, transform_indices = @transform_6, window_bounds = array<i64: 4, 8>}, {pipeline_mode = #tpu.pipeline_mode<synchronous>, transform_indices = @transform_7, window_bounds = array<i64: 4, 8>}, {pipeline_mode = #tpu.pipeline_mode<synchronous>, transform_indices = @transform_8, window_bounds = array<i64: 4, 2>}, {transform_indices = @transform_9, window_bounds = array<i64: 1, 4, 256>}]} {
    %c0 = arith.constant 0 : index
    %c0_0 = arith.constant 0 : index
    %c0_1 = arith.constant 0 : index
    %0 = vector.load %arg1[%c0, %c0_0, %c0_1] : memref<1x4x256xf32, #tpu.memory_space<vmem>>, vector<1x4x256xf32>
    %1 = vector.shape_cast %0 : vector<1x4x256xf32> to vector<4x256xf32>
    %c0_2 = arith.constant 0 : index
    %c0_3 = arith.constant 0 : index
    %2 = vector.load %arg2[%c0_2, %c0_3] : memref<256x32xf32, #tpu.memory_space<vmem>>, vector<256x32xf32>
    %cst = arith.constant dense<0.000000e+00> : vector<4x32xf32>
    %3 = tpu.matmul %1, %2, %cst {dimension_numbers = #tpu.dot_dimension_numbers<[1], [0], [0], [1], [0, 0, 1, 1], [], []>} : vector<4x256xf32>, vector<256x32xf32>, vector<4x32xf32> -> vector<4x32xf32>
    %4 = tpu.iota {dimensions = array<i32: 1>} : vector<1x32xi32>
    %c16_i32 = arith.constant 16 : i32
    %5 = vector.broadcast %c16_i32 : i32 to vector<1x32xi32>
    %6 = arith.cmpi slt, %4, %5 : vector<1x32xi32>
    %cst_4 = arith.constant 6.250000e-02 : f32
    %cst_5 = arith.constant 6.250000e-02 : f32
    %7 = vector.broadcast %cst_4 : f32 to vector<1x32xf32>
    %8 = vector.broadcast %cst_5 : f32 to vector<1x32xf32>
    %9 = arith.select %6, %7, %8 : vector<1x32xi1>, vector<1x32xf32>
    %10 = vector.broadcast %9 : vector<1x32xf32> to vector<4x32xf32>
    %11 = arith.mulf %3, %10 : vector<4x32xf32>
    %c0_6 = arith.constant 0 : index
    %c0_7 = arith.constant 0 : index
    %12 = vector.load %arg5[%c0_6, %c0_7] : memref<8x4xf32, #tpu.memory_space<vmem>>, vector<8x4xf32>
    %cst_8 = arith.constant dense<0.000000e+00> : vector<8x32xf32>
    %13 = tpu.matmul %12, %11, %cst_8 {dimension_numbers = #tpu.dot_dimension_numbers<[1], [0], [0], [1], [0, 0, 1, 1], [], []>} : vector<8x4xf32>, vector<4x32xf32>, vector<8x32xf32> -> vector<8x32xf32>
    %c0_9 = arith.constant 0 : index
    %c0_10 = arith.constant 0 : index
    %14 = vector.load %arg6[%c0_9, %c0_10] : memref<8x1xf32, #tpu.memory_space<vmem>>, vector<8x1xf32>
    %15 = vector.broadcast %14 : vector<8x1xf32> to vector<8x32xf32>
    %16 = arith.addf %13, %15 : vector<8x32xf32>
    %cst_11 = arith.constant 3.000000e+00 : f32
    %17 = vector.broadcast %cst_11 : f32 to vector<8x32xf32>
    %18 = arith.addf %16, %17 : vector<8x32xf32>
    %cst_12 = arith.constant 0.000000e+00 : f32
    %cst_13 = arith.constant 6.000000e+00 : f32
    %19 = vector.broadcast %cst_12 : f32 to vector<8x32xf32>
    %20 = arith.maximumf %19, %18 : vector<8x32xf32>
    %21 = vector.broadcast %cst_13 : f32 to vector<8x32xf32>
    %22 = arith.minimumf %21, %20 : vector<8x32xf32>
    %23 = arith.mulf %16, %22 : vector<8x32xf32>
    %cst_14 = arith.constant 0.166666672 : f32
    %24 = vector.broadcast %cst_14 : f32 to vector<8x32xf32>
    %25 = arith.mulf %23, %24 : vector<8x32xf32>
    %c0_15 = arith.constant 0 : index
    %c0_16 = arith.constant 0 : index
    %26 = vector.load %arg7[%c0_15, %c0_16] : memref<4x8xf32, #tpu.memory_space<vmem>>, vector<4x8xf32>
    %27 = vector.extract_strided_slice %25 {offsets = [0, 0], sizes = [8, 16], strides = [1, 1]} : vector<8x32xf32> to vector<8x16xf32>
    %cst_17 = arith.constant dense<0.000000e+00> : vector<4x16xf32>
    %28 = tpu.matmul %26, %27, %cst_17 {dimension_numbers = #tpu.dot_dimension_numbers<[1], [0], [0], [1], [0, 0, 1, 1], [], []>} : vector<4x8xf32>, vector<8x16xf32>, vector<4x16xf32> -> vector<4x16xf32>
    %c0_18 = arith.constant 0 : index
    %c0_19 = arith.constant 0 : index
    %29 = vector.load %arg9[%c0_18, %c0_19] : memref<4x2xf32, #tpu.memory_space<vmem>>, vector<4x1xf32>
    %30 = vector.broadcast %29 : vector<4x1xf32> to vector<4x16xf32>
    %31 = arith.addf %28, %30 : vector<4x16xf32>
    %32 = arith.negf %31 : vector<4x16xf32>
    %33 = math.exp %32 : vector<4x16xf32>
    %cst_20 = arith.constant 1.000000e+00 : f32
    %34 = vector.broadcast %cst_20 : f32 to vector<4x16xf32>
    %35 = arith.addf %34, %33 : vector<4x16xf32>
    %36 = arith.divf %34, %35 : vector<4x16xf32>
    %c0_21 = arith.constant 0 : index
    %c0_22 = arith.constant 0 : index
    %37 = vector.load %arg8[%c0_21, %c0_22] : memref<4x8xf32, #tpu.memory_space<vmem>>, vector<4x8xf32>
    %38 = vector.extract_strided_slice %25 {offsets = [0, 16], sizes = [8, 16], strides = [1, 1]} : vector<8x32xf32> to vector<8x16xf32>
    %cst_23 = arith.constant dense<0.000000e+00> : vector<4x16xf32>
    %39 = tpu.matmul %37, %38, %cst_23 {dimension_numbers = #tpu.dot_dimension_numbers<[1], [0], [0], [1], [0, 0, 1, 1], [], []>} : vector<4x8xf32>, vector<8x16xf32>, vector<4x16xf32> -> vector<4x16xf32>
    %c0_24 = arith.constant 0 : index
    %c1 = arith.constant 1 : index
    %40 = vector.load %arg9[%c0_24, %c1] : memref<4x2xf32, #tpu.memory_space<vmem>>, vector<4x1xf32>
    %41 = vector.broadcast %40 : vector<4x1xf32> to vector<4x16xf32>
    %42 = arith.addf %39, %41 : vector<4x16xf32>
    %43 = arith.negf %42 : vector<4x16xf32>
    %44 = math.exp %43 : vector<4x16xf32>
    %cst_25 = arith.constant 1.000000e+00 : f32
    %45 = vector.broadcast %cst_25 : f32 to vector<4x16xf32>
    %46 = arith.addf %45, %44 : vector<4x16xf32>
    %47 = arith.divf %45, %46 : vector<4x16xf32>
    %c0_26 = arith.constant 0 : index
    %c0_27 = arith.constant 0 : index
    %48 = vector.load %arg3[%c0_26, %c0_27] : memref<16x256xf32, #tpu.memory_space<vmem>>, vector<16x256xf32>
    %cst_28 = arith.constant dense<0.000000e+00> : vector<4x256xf32>
    %49 = tpu.matmul %36, %48, %cst_28 {dimension_numbers = #tpu.dot_dimension_numbers<[1], [0], [0], [1], [0, 0, 1, 1], [], []>} : vector<4x16xf32>, vector<16x256xf32>, vector<4x256xf32> -> vector<4x256xf32>
    %c0_29 = arith.constant 0 : index
    %c0_30 = arith.constant 0 : index
    %50 = vector.load %arg4[%c0_29, %c0_30] : memref<16x256xf32, #tpu.memory_space<vmem>>, vector<16x256xf32>
    %cst_31 = arith.constant dense<0.000000e+00> : vector<4x256xf32>
    %51 = tpu.matmul %47, %50, %cst_31 {dimension_numbers = #tpu.dot_dimension_numbers<[1], [0], [0], [1], [0, 0, 1, 1], [], []>} : vector<4x16xf32>, vector<16x256xf32>, vector<4x256xf32> -> vector<4x256xf32>
    %52 = arith.mulf %51, %49 : vector<4x256xf32>
    %c0_32 = arith.constant 0 : index
    %c0_33 = arith.constant 0 : index
    %c0_34 = arith.constant 0 : index
    %53 = vector.load %arg1[%c0_32, %c0_33, %c0_34] : memref<1x4x256xf32, #tpu.memory_space<vmem>>, vector<1x4x256xf32>
    %54 = vector.shape_cast %53 : vector<1x4x256xf32> to vector<4x256xf32>
    %55 = arith.mulf %54, %52 : vector<4x256xf32>
    %c0_35 = arith.constant 0 : index
    %c0_36 = arith.constant 0 : index
    %c0_37 = arith.constant 0 : index
    %56 = vector.load %arg10[%c0_35, %c0_36, %c0_37] : memref<1x4x256xf32, #tpu.memory_space<vmem>>, vector<1x4x256xf32>
    %57 = vector.shape_cast %56 : vector<1x4x256xf32> to vector<4x256xf32>
    %58 = vector.shape_cast %55 : vector<4x256xf32> to vector<1x4x256xf32>
    tpu.vector_store %arg10[%c0_35, %c0_36, %c0_37], %58 {strides = array<i32>} : memref<1x4x256xf32, #tpu.memory_space<vmem>>, vector<1x4x256xf32>,
    return
  }
  func.func @transform_0(%arg0: i32) -> (i32, i32, i32) {
    %c0_i32 = arith.constant 0 : i32
    %c0_i32_0 = arith.constant 0 : i32
    %c0_i32_1 = arith.constant 0 : i32
    return %arg0, %c0_i32, %c0_i32_0 : i32, i32, i32
  }
  func.func @transform_1(%arg0: i32) -> (i32, i32) {
    %c0_i32 = arith.constant 0 : i32
    %c0_i32_0 = arith.constant 0 : i32
    %c0_i32_1 = arith.constant 0 : i32
    return %c0_i32, %c0_i32_0 : i32, i32
  }
  func.func @transform_2(%arg0: i32) -> (i32, i32) {
    %c0_i32 = arith.constant 0 : i32
    %c0_i32_0 = arith.constant 0 : i32
    %c0_i32_1 = arith.constant 0 : i32
    return %c0_i32, %c0_i32_0 : i32, i32
  }
  func.func @transform_3(%arg0: i32) -> (i32, i32) {
    %c0_i32 = arith.constant 0 : i32
    %c0_i32_0 = arith.constant 0 : i32
    %c0_i32_1 = arith.constant 0 : i32
    return %c0_i32, %c0_i32_0 : i32, i32
  }
  func.func @transform_4(%arg0: i32) -> (i32, i32) {
    %c0_i32 = arith.constant 0 : i32
    %c0_i32_0 = arith.constant 0 : i32
    %c0_i32_1 = arith.constant 0 : i32
    return %c0_i32, %c0_i32_0 : i32, i32
  }
  func.func @transform_5(%arg0: i32) -> (i32, i32) {
    %c0_i32 = arith.constant 0 : i32
    %c0_i32_0 = arith.constant 0 : i32
    %c0_i32_1 = arith.constant 0 : i32
    return %c0_i32, %c0_i32_0 : i32, i32
  }
  func.func @transform_6(%arg0: i32) -> (i32, i32) {
    %c0_i32 = arith.constant 0 : i32
    %c0_i32_0 = arith.constant 0 : i32
    %c0_i32_1 = arith.constant 0 : i32
    return %c0_i32, %c0_i32_0 : i32, i32
  }
  func.func @transform_7(%arg0: i32) -> (i32, i32) {
    %c0_i32 = arith.constant 0 : i32
    %c0_i32_0 = arith.constant 0 : i32
    %c0_i32_1 = arith.constant 0 : i32
    return %c0_i32, %c0_i32_0 : i32, i32
  }
  func.func @transform_8(%arg0: i32) -> (i32, i32) {
    %c0_i32 = arith.constant 0 : i32
    %c0_i32_0 = arith.constant 0 : i32
    %c0_i32_1 = arith.constant 0 : i32
    return %c0_i32, %c0_i32_0 : i32, i32
  }
  func.func @transform_9(%arg0: i32) -> (i32, i32, i32) {
    %c0_i32 = arith.constant 0 : i32
    %c0_i32_0 = arith.constant 0 : i32
    %c0_i32_1 = arith.constant 0 : i32
    return %arg0, %c0_i32, %c0_i32_0 : i32, i32, i32
  }
}

</mosaic_0001>

<bundles_post_ra>
// kernel: tpu_custom_call.1
= control target key start
LH: loop header
LB: loop body
LE: loop exit
PB: predicated region body
PF: predicated region fallthrough
CT: control target
= control target key end

     0   :  { %14 = vsyncpa [#allocation3], 0  ;;  %s1157_s0 = inlined_call_operand.vmem [shape: f32[2,4,256], index: 0, kind: input, shape index: {}]   ;;  %s1158_s1 = inlined_call_operand.vmem [shape: f32[256,32], index: 1, kind: input, shape index: {}]   ;;  %s1159_s2 = inlined_call_operand.vmem [shape: f32[16,256], index: 2, kind: input, shape index: {}]   ;;  %s1160_s3 = inlined_call_operand.vmem [shape: f32[16,256], index: 3, kind: input, shape index: {}]   ;;  %s1161_s4 = inlined_call_operand.vmem [shape: f32[8,4], index: 4, kind: input, shape index: {}]   ;;  %s1162_s5 = inlined_call_operand.vmem [shape: f32[8,1], index: 5, kind: input, shape index: {}]   ;;  %s1163_s6 = inlined_call_operand.vmem [shape: f32[4,8], index: 6, kind: input, shape index: {}]   ;;  %s1164_s7 = inlined_call_operand.vmem [shape: f32[4,8], index: 7, kind: input, shape index: {}]   ;;  %s1165_s8 = inlined_call_operand.vmem [shape: f32[4,2], index: 8, kind: input, shape index: {}]   ;;  %s1166_s9 = inlined_call_operand.hbm [shape: f32[2,4,256], index: 9, kind: output, shape index: {}]  }
   0x1   :  { %16 = vsyncpa [#allocation3 + $0x1], 0  ;;  %s927_s30 = smov 0   ;;  %s929_s10 = smov 0  }
   0x2   :  { %s931_s11 = smov 0   ;;  %s933_s12 = smov 0  }
   0x3 LB: > { %s948_s13 = sadd.s32 4294967295, %s872_s12   ;;  %s732_s14 = sadd.s32 4294967294, %s872_s12   ;;  %s872_s12 = sphi %s933_s12, %s1172_s12   ;;  %s868_s11 = sphi %s931_s11, %s1171_s11   ;;  %s864_s10 = sphi %s929_s10, %s1170_s10   ;;  %s860_s30 = sphi %s927_s30, %s1169_s30  }
   0x4   : > { %s952_s15 = sadd.s32 1, %s872_s12   ;;  %s223_s16 = sadd.s32 1, %s868_s11 }
   0x5   : > { %s220_s17 = ssub.s32 %s872_s12, %s952_s15  ;;  %p233_p0 = scmp.ne.s32.totalorder %s868_s11, %s864_s10 }
   0x6   : > { %p221_p1 = scmp.eq.s32.totalorder %s220_s17, 0  ;;  %p234_p2 = scmp.eq.s32.totalorder %s948_s13, 1 }
   0x7   : > { %p239_p3 = scmp.ne.s32.totalorder %s864_s10, %s860_s30  ;;  %p240_p4 = scmp.eq.s32.totalorder %s732_s14, 1 }
   0x8   : > { %s963_s18 = scalar_select %p221_p1, %s868_s11, %s223_s16  }
   0x9   : > { %p965_p5 = por %p234_p2, %p233_p0  ;;  %p969_p6 = por %p240_p4, %p239_p3 }
   0xa   : > { %p735_p7 = scmp.ge.s32.totalorder %s872_s12, 1  ;;  %p290_p8 = scmp.lt.s32.totalorder %s872_s12, 3 }
   0xc   : > { %p291_p9 = pnand %p735_p7, %p290_p8 }
   0xd   : > { %p326_p10 = scmp.lt.s32.totalorder (!%p291_p9), %s948_s13, 1  ;;  %s323_s23 = sand.u32 (!%p291_p9), 1, %s864_s10  }
   0xe   : > { %294 = sbr.rel (%p291_p9) target bundleno = 747 (0x2eb), region = 56  ;;  %s736_s24 = sshll.u32 (!%p291_p9), %s323_s23, 3 }
   0xf   : > { %s325_s28 = scalar_lea.vmem (!%p291_p9), [#allocation2], %s736_s24  ;;  %s830_s24 = scalar_lea.hbm (!%p291_p9), %s1166_s9, 16 }
  0x10   : > { %s670_s29 = sshll.u32 (!%p291_p9), %s325_s28, 4  ;;  %s671_s29 = int_to_ptr.vmem [resolvable:$true] %s670_s29 }
  0x13   : > { %v347_v0 = vld [vmem:[%s1158_s1 + $0x78] sm:$0xff]  ;;  %v346_v2 = vld [vmem:[%s1158_s1 + $0x70] sm:$0xff]  ;;  %v345_v4 = vld [vmem:[%s1158_s1 + $0x68] sm:$0xff]  ;;  %s327_s21 = scalar_select %p326_p10, %s948_s13, 1  ;;  %v874_v36 = vmov 0   ;;  %vm422_vm0 = vcmask 1043456  }
  0x14   : > { %v363_v1 = vld [vmem:[%s1158_s1 + $0xf8] sm:$0xff]  ;;  %370 = vmatpush.msra.mxu0 %v347_v0  ;;  %v362_v3 = vld [vmem:[%s1158_s1 + $0xf0] sm:$0xff]  ;;  %v361_v5 = vld [vmem:[%s1158_s1 + $0xe8] sm:$0xff]  ;;  %798 = vset.pattern.permute.xlu0 %v874_v36  ;;  %vm418_vm1 = vcmask 31744   ;;  %vm458_vm2 = vcmask 64512   ;;  %v876_v52 = vmov 1  }
  0x15   : > { %390 = vmatpush.msra.mxu1 %v363_v1  ;;  %v344_v6 = vld [vmem:[%s1158_s1 + $0x60] sm:$0xff]  ;;  %s754_s26 = sshll.u32 %s327_s21, 3  ;;  %v343_v8 = vld [vmem:[%s1158_s1 + $0x58] sm:$0xff]  ;;  %v342_v10 = vld [vmem:[%s1158_s1 + $0x50] sm:$0xff]  ;;  %799 = vset.pattern.permute.xlu1 %v874_v36  ;;  %vm556_vm7 = vcmask 130048   ;;  %s755_s21 = sshll.u32 %s948_s13, 3 }
  0x16   : > { %371 = vmatpush.msra.mxu0 %v346_v2  ;;  %v360_v7 = vld [vmem:[%s1158_s1 + $0xe0] sm:$0xff]  ;;  %v359_v9 = vld [vmem:[%s1158_s1 + $0xd8] sm:$0xff]  ;;  %s330_s22 = scalar_lea.vmem %s1157_s0, %s754_s26  ;;  %v358_v11 = vld [vmem:[%s1158_s1 + $0xd0] sm:$0xff]  ;;  %s668_s27 = scalar_lea.hbm %s1166_s9, %s755_s21 }
  0x17   : > { %391 = vmatpush.msra.mxu1 %v362_v3  ;;  %v341_v12 = vld [vmem:[%s1158_s1 + $0x48] sm:$0xff]  ;;  %v1022_v14 = vld [vmem:[%s330_s22] sm:$0xff]  ;;  %v339_v17 = vld [vmem:[%s1158_s1 + $0x38] sm:$0xff]  ;;  %s875_s22 = smov 112   ;;  %s672_s14 = sshll.u32 %s668_s27, 4  ;;  %s673_s14 = int_to_ptr.hbm [resolvable:$true] %s672_s14 }
  0x18   : > { %372 = vmatpush.msra.mxu0 %v345_v4  ;;  %v357_v13 = vld [vmem:[%s1158_s1 + $0xc8] sm:$0xff]  ;;  %365 = vst [vmem:[#allocation1] ss:$2 sm:$0xff] %v1022_v14  ;;  %v340_v15 = vld [vmem:[%s1158_s1 + $0x40] sm:$0xff]  ;;  %v355_v18 = vld [vmem:[%s1158_s1 + $0xb8] sm:$0xff]  ;;  %s657_s13 = scalar_lea.sflag [#allocation3], %s323_s23 }
  0x19   : > { %392 = vmatpush.msra.mxu1 %v361_v5  ;;  %v356_v16 = vld [vmem:[%s1158_s1 + $0xc0] sm:$0xff]  ;;  %v338_v19 = vld [vmem:[%s1158_s1 + $0x30] sm:$0xff]  ;;  %v337_v21 = vld [vmem:[%s1158_s1 + $0x28] sm:$0xff]  ;;  %s824_s26 = sshra.s32 %s673_s14, 4  ;;  %s825_s26 = int_to_ptr.hbm [resolvable:$true] %s824_s26 }
  0x1a   : > { %373 = vmatpush.msra.mxu0 %v344_v6  ;;  %v354_v20 = vld [vmem:[%s1158_s1 + $0xb0] sm:$0xff]  ;;  %v353_v22 = vld [vmem:[%s1158_s1 + $0xa8] sm:$0xff]  ;;  %v336_v23 = vld [vmem:[%s1158_s1 + $0x20] sm:$0xff]  ;;  %s826_s16 = scalar_lea.hbm %s825_s26, 8  ;;  %p831_p0 = scmp.lt.s32.totalorder %s825_s26, %s1166_s9 }
  0x1b   : > { %393 = vmatpush.msra.mxu1 %v360_v7  ;;  %v352_v24 = vld [vmem:[%s1158_s1 + $0xa0] sm:$0xff]  ;;  %v335_v25 = vld [vmem:[%s1158_s1 + $0x18] sm:$0xff]  ;;  %v334_v27 = vld [vmem:[%s1158_s1 + $0x10] sm:$0xff]  ;;  %p827_p11 = scmp.ne.s32.totalorder %s825_s26, %s826_s16  ;;  %p832_p1 = scmp.lt.s32.totalorder %s830_s24, %s826_s16 }
  0x1c   : > { %374 = vmatpush.msra.mxu0 %v343_v8  ;;  %v351_v26 = vld [vmem:[%s1158_s1 + $0x98] sm:$0xff]  ;;  %v350_v28 = vld [vmem:[%s1158_s1 + $0x90] sm:$0xff]  ;;  %v333_v29 = vld [vmem:[%s1158_s1 + $0x8] sm:$0xff] }
  0x1d   : > { %394 = vmatpush.msra.mxu1 %v359_v9  ;;  %v349_v30 = vld [vmem:[%s1158_s1 + $0x88] sm:$0xff]  ;;  %v332_v31 = vld [vmem:[%s1158_s1] sm:$0xff]  ;;  %v554_v2 = vld [vmem:[%s1159_s2 + $0x10] sm:$0xff]  ;;  %p828_p12 = pnand %p827_p11, %p965_p5  ;;  %p833_p2 = por %p832_p1, %p831_p0 }
  0x1e   : > { %375 = vmatpush.msra.mxu0 %v342_v10  ;;  %v348_v32 = vld [vmem:[%s1158_s1 + $0x80] sm:$0xff]  ;;  %v555_v3 = vld [vmem:[%s1159_s2 + $0x18] sm:$0xff]  ;;  %v553_v8 = vld [vmem:[%s1159_s2 + $0x8] sm:$0xff] }
  0x1f   : > { %395 = vmatpush.msra.mxu1 %v358_v11  ;;  %v366_v33 = vld.sshfl [vmem:[#allocation1] sm:$0xff pattern:$0x75316420]  ;;  %v367_v34 = vld.sshfl [vmem:[#allocation1 + $0x8] sm:$0xff pattern:$0x75316420]  ;;  %p829_p13 = pneg %p828_p12 }
  0x20   : > { %376 = vmatpush.msra.mxu0 %v341_v12  ;;  %v412_v35 = vld [vmem:[%s1162_s5] sm:$0xff]  ;;  %v602_v11 = vld [vmem:[%s1160_s3 + $0x10] sm:$0xff]  ;;  %v603_v12 = vld [vmem:[%s1160_s3 + $0x18] sm:$0xff] }
  0x21   : > { %396 = vmatpush.msra.mxu1 %v357_v13  ;;  %415 = vperm.xlu0 %798, %v412_v35   ;;  %v411_v41 = vld [vmem:[%s1161_s4] sm:$0xff]  ;;  %p834_p3 = pnand %p833_p2, %p829_p13 }
  0x22   : > { %377 = vmatpush.msra.mxu0 %v340_v15  ;;  %v451_v50 = vld [vmem:[%s1163_s6] sm:$0xf]  ;;  %v601_v15 = vld [vmem:[%s1160_s3 + $0x8] sm:$0xff] }
  0x23   : > { %397 = vmatpush.msra.mxu1 %v356_v16  ;;  %v452_v51 = vld [vmem:[%s1165_s8] sm:$0xf] }
  0x24   : > { %378 = vmatpush.msra.mxu0 %v339_v17  ;;  %455 = vperm.xlu1 %799, %v452_v51   ;;  %v501_v53 = vld [vmem:[%s1164_s7] sm:$0xf] }
  0x25   : > { %398 = vmatpush.msra.mxu1 %v355_v18  ;;  %v552_v7 = vld [vmem:[%s1159_s2] sm:$0xff] }
  0x26   : > { %379 = vmatpush.msra.mxu0 %v338_v19  ;;  %v600_v13 = vld [vmem:[%s1160_s3] sm:$0xff] }
  0x27   : > { %399 = vmatpush.msra.mxu1 %v354_v20 }
  0x28   : > { %380 = vmatpush.msra.mxu0 %v337_v21 }
  0x29   : > { %400 = vmatpush.msra.mxu1 %v353_v22  ;;  %801 = vset.pattern.permute.xlu0 %v876_v52 }
  0x2a   : > { %381 = vmatpush.msra.mxu0 %v336_v23 }
  0x2b   : > { %401 = vmatpush.msra.mxu1 %v352_v24 }
  0x2c   : > { %382 = vmatpush.msra.mxu0 %v335_v25  ;;  %800 = vset.pattern.permute.xlu1 %v876_v52 }
  0x2d   : > { %402 = vmatpush.msra.mxu1 %v351_v26  ;;  %503 = vperm.xlu1 %800, %v452_v51  }
  0x2e   : > { %383 = vmatpush.msra.mxu0 %v334_v27 }
  0x2f   : > { %403 = vmatpush.msra.mxu1 %v350_v28 }
  0x30   : > { %384 = vmatpush.msra.mxu0 %v333_v29 }
  0x31   : > { %404 = vmatpush.msra.mxu1 %v349_v30 }
  0x32   : > { %385 = vmatpush.msra.mxu0 %v332_v31 }
  0x33   : > { %405 = vmatpush.msra.mxu1 %v348_v32  ;;  %386 = vmatmul.f32.vlgmr.msra.gmra.mxu0 %v366_v33 }
  0x34   : > { %406 = vmatmul.f32.vlgmr.msra.gmra.mxu1 %v367_v34 }
  0x93   : > { %v416_v42 = vpop.permute.xlu0 %415 }
  0x96   : > { %v456_v56 = vpop.permute.xlu1 %455 }
  0x9f   : > { %v504_v16 = vpop.permute.xlu1 %503 }
  0xb0   : > { %v387_v37 = vpop.f32.mrf.mxu0 }
  0xb1   : > { %v407_v38 = vpop.f32.mrf.mxu1 }
  0xb2   : > { %v408_v39 = vadd.f32 %v407_v38, %v387_v37 }
  0xb4   : > { %v410_v40 = vmul.f32 0.0625, %v408_v39 }
  0xb6   : > { %739 = vmatpush.msk.msra.mxu2 %vm422_vm0, %v410_v40 }
  0xb7   : > { %740 = vmatmul.msk.f32.vlgmr.msra.gmra.mxu2 %vm418_vm1, %v411_v41 }
 0x13a   : > { %v443_v43 = vpop.f32.mrf.mxu2 }
 0x13b   : > { %v444_v44 = vadd.f32 %v443_v43, %v416_v42 }
 0x13d   : > { %v446_v45 = vadd.f32 3.0, %v444_v44 }
 0x13f   : > { %v447_v46 = vmax.f32 %v446_v45, 0.0 }
 0x141   : > { %v448_v47 = vmin.f32 %v447_v46, 6.0 }
 0x143   : > { %v449_v48 = vmul.f32 %v448_v47, %v444_v44 }
 0x145   : > { %v450_v49 = vmul.f32 0.16666667, %v449_v48 }
 0x147   : > { %507 = vrot.lane.b32.xlu0 %v450_v49, %s875_s22  ;;  %477 = vmatpush.msra.mxu3 %v450_v49 }
 0x148   : > { %741 = vmatmul.msk.f32.vlgmr.msra.gmra.mxu3 %vm458_vm2, %v451_v50 }
 0x149   : > { %574 = vmatpush.msrb.mxu3 %v554_v2 }
 0x14b   : > { %575 = vmatpush.msrb.mxu3 %v552_v7 }
 0x14d   : > { %621 = vmatpush.msra.mxu3 %v602_v11 }
 0x14f   : > { %622 = vmatpush.msra.mxu3 %v600_v13 }
 0x1b9   : > { %v508_v54 = vpop.permute.xlu0 %507 }
 0x1ba   : > { %528 = vmatpush.msrb.mxu2 %v508_v54 }
 0x1bb   : > { %743 = vmatmul.msk.f32.vlgmr.msrb.gmra.mxu2 %vm458_vm2, %v501_v53 }
 0x1bc   : > { %594 = vmatpush.msra.mxu2 %v555_v3 }
 0x1be   : > { %595 = vmatpush.msra.mxu2 %v553_v8 }
 0x1c0   : > { %641 = vmatpush.msrb.mxu2 %v603_v12 }
 0x1c2   : > { %642 = vmatpush.msrb.mxu2 %v601_v15 }
 0x1cb   : > { %v479_v55 = vpop.f32.mrf.mxu3 }
 0x1cc   : > { %v480_v57 = vadd.f32 %v479_v55, %v456_v56 }
 0x1ce   : > { %v742_v58 = vmul.f32 -1.442695, %v480_v57 }
 0x1d0   : > { %802 = vpow2.f32 %v742_v58 }
 0x1d6   : > { %v803_v59 = vpop.eup %802 }
 0x1d7   : > { %v485_v60 = vadd.f32 1.0, %v803_v59 }
 0x1d9   : > { %804 = vrcp.f32 %v485_v60  ;;  %v497_v1 = vand.u32 2147483648, %v485_v60  ;;  %vm491_vm3 = vweird.f32 %v485_v60  ;;  %v495_v5 = vand.u32 2147483647, %v485_v60 }
 0x1db   : > { %v498_v6 = vor.u32 1.1754944e-38, %v497_v1  ;;  %vm496_vm6 = vcmp.eq.f32.partialorder %v495_v5, 8.507059e+37 }
 0x1df   : > { %v805_v61 = vpop.eup %804 }
 0x1e0   : > { %v487_v62 = vmul.f32 %v805_v61, %v485_v60  ;;  %vm492_vm4 = vweird.f32 %v805_v61 }
 0x1e1   : > { %vm493_vm5 = vmor %vm491_vm3, %vm492_vm4 }
 0x1e2   : > { %v488_v63 = vsub.f32 1.0, %v487_v62 }
 0x1e4   : > { %v489_v0 = vmul.f32 %v805_v61, %v488_v63 }
 0x1e6   : > { %v490_v4 = vadd.f32 %v805_v61, %v489_v0 }
 0x1e8   : > { %v494_v9 = vsel %vm493_vm5, %v805_v61, %v490_v4 }
 0x1e9   : > { %v499_v10 = vsel %vm496_vm6, %v498_v6, %v494_v9 }
 0x1ea   : > { %745 = vmatmul.msk.f32.vlgmr.msrb.gmra.mxu3 %vm556_vm7, %v499_v10  ;;  %746 = vmatmul.msk.f32.vlgmr.msra.gmra.mxu2 %vm556_vm7, %v499_v10 }
 0x23e   : > { %v530_v17 = vpop.f32.mrf.mxu2 }
 0x23f   : > { %v531_v18 = vadd.f32 %v530_v17, %v504_v16 }
 0x241   : > { %v744_v19 = vmul.f32 -1.442695, %v531_v18 }
 0x243   : > { %806 = vpow2.f32 %v744_v19 }
 0x249   : > { %v807_v20 = vpop.eup %806 }
 0x24a   : > { %v536_v21 = vadd.f32 1.0, %v807_v20 }
 0x24c   : > { %808 = vrcp.f32 %v536_v21  ;;  %v548_v25 = vand.u32 2147483648, %v536_v21  ;;  %v546_v27 = vand.u32 2147483647, %v536_v21  ;;  %vm542_vm9 = vweird.f32 %v536_v21 }
 0x24e   : > { %v549_v29 = vor.u32 1.1754944e-38, %v548_v25  ;;  %vm547_vm11 = vcmp.eq.f32.partialorder %v546_v27, 8.507059e+37 }
 0x252   : > { %v809_v22 = vpop.eup %808 }
 0x253   : > { %v538_v23 = vmul.f32 %v809_v22, %v536_v21  ;;  %vm543_vm8 = vweird.f32 %v809_v22 }
 0x254   : > { %vm544_vm10 = vmor %vm542_vm9, %vm543_vm8 }
 0x255   : > { %v539_v24 = vsub.f32 1.0, %v538_v23 }
 0x257   : > { %v540_v26 = vmul.f32 %v809_v22, %v539_v24 }
 0x259   : > { %v541_v28 = vadd.f32 %v809_v22, %v540_v26 }
 0x25b   : > { %v545_v30 = vsel %vm544_vm10, %v809_v22, %v541_v28 }
 0x25c   : > { %v550_v31 = vsel %vm547_vm11, %v549_v29, %v545_v30 }
 0x25d   : > { %747 = vmatmul.msk.f32.vlgmr.msra.gmra.mxu3 %vm556_vm7, %v550_v31  ;;  %748 = vmatmul.msk.f32.vlgmr.msrb.gmra.mxu2 %vm556_vm7, %v550_v31 }
 0x26d   : > { %v577_v32 = vpop.f32.mrf.mxu3  ;;  %v597_v33 = vpop.f32.mrf.mxu2 }
 0x2e0   : > { %v624_v34 = vpop.f32.mrf.mxu3  ;;  %v644_v35 = vpop.f32.mrf.mxu2 }
 0x2e1   : > { %v648_v36 = vmul.f32 %v644_v35, %v597_v33  ;;  %v647_v37 = vmul.f32 %v624_v34, %v577_v32 }
 0x2e3   : > { %v651_v38 = vrot.slane %v648_v36, 4 }
 0x2e5   : > { %v652_v39 = vsel %vm422_vm0, %v647_v37, %v651_v38 }
 0x2e6   : > { %v654_v40 = vmul.f32 %v652_v39, %v1022_v14 }
 0x2e8   : > { %655 = vst [vmem:[%s325_s28] sm:$0xff] %v654_v40 }
 0x2e9   : > { %837 = shalt.err (!%p834_p3)
}
 0x2ea   : > { %756 = dma.vmem_to_hbm [thread:$0]  (%p965_p5), %s671_s29, 128, %s673_s14, %s657_s13  }
 0x2eb PF: > { %p762_p4 = scmp.ge.s32.totalorder %s872_s12, 2  ;;  %s684_s23 = sand.u32 1, %s860_s30  }
 0x2ec   : > { %s685_s27 = scalar_lea.sflag [#allocation3], %s684_s23 }
 0x2ed   : > { %p759_p7 = pnand %p762_p4, %p969_p6 }
 0x2ef   : > { %p760_p8 = pneg %p759_p7 }
 0x2f1   : > { %855 = dma.done.wait (%p760_p8), %s685_s27, 128  }
 0x2f2   : > { %857 = vsyncadd (%p760_p8), %s685_s27, 4294967168  ;;  %p19_p9 = scmp.ge.s32.totalorder %s952_s15, 4   ;;  %s1169_s30 = smov %s864_s10 }
 0x2f3   : > { %s1170_s10 = smov %s868_s11  ;;  %s1171_s11 = smov %s963_s18 }
 0x2f4   : > { %s1172_s12 = smov %s952_s15  ;;  %21 = sbr.rel (!%p19_p9) target bundleno = 3 (0x3), region = 91 }
 0x2f9   :  { %691 = vsyncpa [#allocation3], 1 }
 0x2fa   :  { %693 = vsyncpa [#allocation3 + $0x1], 1 }

</bundles_post_ra>
